<compile_context>
chip_gen: v7x
topology: tpu7x:2x2x1
jax: 0.10.0
libtpu: 0.0.40
codegen_flags: <defaults>
</compile_context>

<pallas_src>
import jax
import jax.numpy as jnp
from jax.experimental import pallas as pl
from jax.experimental.pallas import tpu as pltpu


def _flash_attn_kernel(q_ref, k_ref, v_ref, wo_ref, bo_ref, o_ref,
                       m_sc, l_sc, acc_sc):
    ki = pl.program_id(2)
    nk = pl.num_programs(2)

    @pl.when(ki == 0)
    def _init():
        m_sc[...] = jnp.full(m_sc.shape, -jnp.inf, dtype=m_sc.dtype)
        l_sc[...] = jnp.zeros(l_sc.shape, dtype=l_sc.dtype)
        acc_sc[...] = jnp.zeros(acc_sc.shape, dtype=acc_sc.dtype)

    q = q_ref[0]                       # [H, tq,  dh] bf16 (softmax scale pre-folded)
    k = k_ref[0]                       # [H, tkv, dh] bf16
    v = v_ref[0]                       # [H, tkv, dh] bf16

    # Batched-over-heads scores, f32 accumulate on the MXU.
    s = jnp.einsum('hqc,hkc->hqk', q, k,
                   preferred_element_type=jnp.float32)              # [H, tq, tkv]

    m_prev = m_sc[...]                                               # [H, tq, 1]
    m_new = jnp.maximum(m_prev, jnp.max(s, axis=-1, keepdims=True))
    alpha = jnp.exp(m_prev - m_new)
    # Note: post K/V-hoist the f32 exp on the single EUP is the likely binding
    # unit of this loop — keep any extra VPU/EUP work out of the hot path.
    p = jnp.exp(s - m_new)
    l_sc[...] = alpha * l_sc[...] + jnp.sum(p, axis=-1, keepdims=True)
    acc_sc[...] = alpha * acc_sc[...] + jnp.einsum(
        'hqk,hkc->hqc', p.astype(jnp.bfloat16), v,
        preferred_element_type=jnp.float32)                          # [H, tq, dh]
    m_sc[...] = m_new

    @pl.when(ki == nk - 1)
    def _finalize():
        o = acc_sc[...] * pl.reciprocal(l_sc[...], approx=False)     # [H, tq, dh]
        # Fused output projection: y = sum_h o_h @ Wo_h  (+ bias).  One batched
        # MXU op + a head-axis reduction instead of an unrolled per-head chain.
        yh = jnp.einsum('hqc,hcd->hqd', o.astype(jnp.bfloat16), wo_ref[...],
                        preferred_element_type=jnp.float32)          # [H, tq, D]
        y = jnp.sum(yh, axis=0) + bo_ref[...]                        # [tq, D]
        o_ref[0] = y.astype(o_ref.dtype)


def linear_attention_forward(x, wqkv, wo, bo, *, nheads, dim_head,
                             q_tile=256, kv_tile=512,
                             vmem_limit_bytes=32 * 1024 * 1024):
    """x: [B, L, D]. wqkv: [3*hidden, D] (PyTorch layout). wo: [D, hidden]. bo: [1, D].
    Returns [B, L, D]."""
    B, L, D = x.shape
    hidden = nheads * dim_head
    assert wqkv.shape == (3 * hidden, D)
    assert wo.shape == (D, hidden)
    assert bo.shape == (1, D)
    scale = dim_head ** (-0.5)

    # v6e/v7x-friendly defaults (256-deep MXU); prefer q_tile=128 / kv_tile=256 on v5e.
    tq = min(L, q_tile)
    tkv = min(L, kv_tile)
    assert L % tq == 0 and L % tkv == 0, "sequence length must divide the tile sizes"

    # --- One-time XLA prep: fused QKV projection, head-major bf16 layout. ---------
    qkv = jnp.dot(x, wqkv.T)                               # [B, L, 3*hidden] f32
    q, k, v = jnp.split(qkv, 3, axis=-1)

    def to_heads(t):
        t = t.reshape(B, L, nheads, dim_head).transpose(0, 2, 1, 3)
        return t.astype(jnp.bfloat16)                      # [B, H, L, dh]

    q = to_heads(q * scale)                 # fold softmax scale into Q (f32), then cast
    k = to_heads(k)
    v = to_heads(v)
    wo_heads = wo.T.reshape(nheads, dim_head, D).astype(jnp.bfloat16)   # [H, dh, D]
    bo_f32 = bo.astype(jnp.float32)

    grid = (B, L // tq, L // tkv)

    return pl.pallas_call(
        _flash_attn_kernel,
        out_shape=jax.ShapeDtypeStruct((B, L, D), x.dtype),
        grid_spec=pltpu.PrefetchScalarGridSpec(
            num_scalar_prefetch=0,
            grid=grid,
            in_specs=[
                pl.BlockSpec((1, nheads, tq, dim_head),
                             lambda b, qi, ki: (b, 0, qi, 0)),   # Q tile (const over ki)
                pl.BlockSpec((1, nheads, tkv, dim_head),
                             lambda b, qi, ki: (b, 0, ki, 0)),   # K tile
                pl.BlockSpec((1, nheads, tkv, dim_head),
                             lambda b, qi, ki: (b, 0, ki, 0)),   # V tile
                pl.BlockSpec((nheads, dim_head, D),
                             lambda b, qi, ki: (0, 0, 0)),       # Wo, per-head tiles
                pl.BlockSpec((1, D), lambda b, qi, ki: (0, 0)),  # output bias
            ],
            out_specs=pl.BlockSpec((1, tq, D), lambda b, qi, ki: (b, qi, 0)),
            scratch_shapes=[
                pltpu.VMEM((nheads, tq, 1), jnp.float32),        # running max
                pltpu.VMEM((nheads, tq, 1), jnp.float32),        # running sum
                pltpu.VMEM((nheads, tq, dim_head), jnp.float32), # output accumulator
            ],
        ),
        compiler_params=pltpu.CompilerParams(
            dimension_semantics=("parallel", "parallel", "arbitrary"),
            vmem_limit_bytes=vmem_limit_bytes),
    )(q, k, v, wo_heads, bo_f32)


def _reference(x, wqkv, wo, bo, *, nheads, dim_head):
    B, L, D = x.shape
    hidden = nheads * dim_head
    scale = dim_head ** (-0.5)
    qkv = jnp.einsum('bld,od->blo', x, wqkv)
    q, k, v = jnp.split(qkv, 3, axis=-1)
    q = q.reshape(B, L, nheads, dim_head)
    k = k.reshape(B, L, nheads, dim_head)
    v = v.reshape(B, L, nheads, dim_head)
    s = jnp.einsum('bqhd,bkhd->bhqk', q, k) * scale
    p = jax.nn.softmax(s, axis=-1)
    o = jnp.einsum('bhqk,bkhd->bqhd', p, v).reshape(B, L, hidden)
    return jnp.einsum('blh,dh->bld', o, wo) + bo[0]


if __name__ == "__main__":
    # Small, deterministic config.
    B, L, dim = 2, 8, 32
    nheads, dim_head = 2, 16
    hidden = nheads * dim_head

    key = jax.random.PRNGKey(0)
    kx, kqkv, kwo, kbo = jax.random.split(key, 4)

    x = jax.random.normal(kx, (B, L, dim), dtype=jnp.float32)
    # PyTorch-style weight shapes: Linear(dim, 3*hidden, bias=False) -> [3*hidden, dim]
    wqkv = jax.random.normal(kqkv, (3 * hidden, dim), dtype=jnp.float32) * 0.1
    # Linear(hidden, dim) -> weight [dim, hidden], bias [dim] (kept as [1, dim])
    wo = jax.random.normal(kwo, (dim, hidden), dtype=jnp.float32) * 0.1
    bo = jax.random.normal(kbo, (1, dim), dtype=jnp.float32) * 0.1

    out = linear_attention_forward(x, wqkv, wo, bo,
                                   nheads=nheads, dim_head=dim_head)
    out = jax.block_until_ready(out)

    ref = _reference(x, wqkv, wo, bo, nheads=nheads, dim_head=dim_head)
    assert out.shape == (B, L, dim)
    # bf16 MXU inputs (f32 accumulate / f32 softmax) => compare at bf16-level tolerance.
    assert jnp.allclose(out, ref, atol=2e-2, rtol=2e-2), "mismatch vs reference"

    print("KERNEL_OK")
</pallas_src>

<mosaic_0001>
module attributes {stable_mosaic.version = 11 : i64} {
  func.func @_flash_attn_kernel(%arg0: i32, %arg1: i32, %arg2: i32, %arg3: memref<1x2x8x16xbf16, #tpu.memory_space<vmem>>, %arg4: memref<1x2x8x16xbf16, #tpu.memory_space<vmem>>, %arg5: memref<1x2x8x16xbf16, #tpu.memory_space<vmem>>, %arg6: memref<2x16x32xbf16, #tpu.memory_space<vmem>>, %arg7: memref<1x32xf32, #tpu.memory_space<vmem>>, %arg8: memref<1x8x32xf32, #tpu.memory_space<vmem>>, %arg9: memref<2x8x1xf32, #tpu.memory_space<vmem>>, %arg10: memref<2x8x1xf32, #tpu.memory_space<vmem>>, %arg11: memref<2x8x16xf32, #tpu.memory_space<vmem>>) attributes {dimension_semantics = [#tpu.dimension_semantics<parallel>, #tpu.dimension_semantics<parallel>, #tpu.dimension_semantics<arbitrary>], iteration_bounds = array<i64: 2, 1, 1>, scalar_prefetch = 0 : i64, scratch_operands = 3 : i64, tpu.core_type = #tpu.core_type<tc>, window_params = [{transform_indices = @transform_0, window_bounds = array<i64: 1, 2, 8, 16>}, {transform_indices = @transform_1, window_bounds = array<i64: 1, 2, 8, 16>}, {transform_indices = @transform_2, window_bounds = array<i64: 1, 2, 8, 16>}, {pipeline_mode = #tpu.pipeline_mode<synchronous>, transform_indices = @transform_3, window_bounds = array<i64: 2, 16, 32>}, {pipeline_mode = #tpu.pipeline_mode<synchronous>, transform_indices = @transform_4, window_bounds = array<i64: 1, 32>}, {transform_indices = @transform_5, window_bounds = array<i64: 1, 8, 32>}]} {
    %c0_i32 = arith.constant 0 : i32
    %0 = arith.cmpi eq, %arg2, %c0_i32 : i32
    %1 = arith.extui %0 : i1 to i32
    %c0_i32_0 = arith.constant 0 : i32
    %2 = arith.cmpi ne, %1, %c0_i32_0 : i32
    scf.if %2 {
      %cst_35 = arith.constant 0xFF800000 : f32
      %36 = vector.broadcast %cst_35 : f32 to vector<2x8x1xf32>
      %c0_36 = arith.constant 0 : index
      %c0_37 = arith.constant 0 : index
      %c0_38 = arith.constant 0 : index
      %37 = vector.load %arg9[%c0_36, %c0_37, %c0_38] : memref<2x8x1xf32, #tpu.memory_space<vmem>>, vector<2x8x1xf32>
      tpu.vector_store %arg9[%c0_36, %c0_37, %c0_38], %36 {strides = array<i32>} : memref<2x8x1xf32, #tpu.memory_space<vmem>>, vector<2x8x1xf32>,
      %cst_39 = arith.constant 0.000000e+00 : f32
      %38 = vector.broadcast %cst_39 : f32 to vector<2x8x1xf32>
      %c0_40 = arith.constant 0 : index
      %c0_41 = arith.constant 0 : index
      %c0_42 = arith.constant 0 : index
      %39 = vector.load %arg10[%c0_40, %c0_41, %c0_42] : memref<2x8x1xf32, #tpu.memory_space<vmem>>, vector<2x8x1xf32>
      tpu.vector_store %arg10[%c0_40, %c0_41, %c0_42], %38 {strides = array<i32>} : memref<2x8x1xf32, #tpu.memory_space<vmem>>, vector<2x8x1xf32>,
      %cst_43 = arith.constant 0.000000e+00 : f32
      %40 = vector.broadcast %cst_43 : f32 to vector<2x8x16xf32>
      %c0_44 = arith.constant 0 : index
      %c0_45 = arith.constant 0 : index
      %c0_46 = arith.constant 0 : index
      %41 = vector.load %arg11[%c0_44, %c0_45, %c0_46] : memref<2x8x16xf32, #tpu.memory_space<vmem>>, vector<2x8x16xf32>
      tpu.vector_store %arg11[%c0_44, %c0_45, %c0_46], %40 {strides = array<i32>} : memref<2x8x16xf32, #tpu.memory_space<vmem>>, vector<2x8x16xf32>,
    } else {
    }
    %c0 = arith.constant 0 : index
    %c0_1 = arith.constant 0 : index
    %c0_2 = arith.constant 0 : index
    %c0_3 = arith.constant 0 : index
    %3 = vector.load %arg3[%c0, %c0_1, %c0_2, %c0_3] : memref<1x2x8x16xbf16, #tpu.memory_space<vmem>>, vector<1x2x8x16xbf16>
    %4 = vector.shape_cast %3 : vector<1x2x8x16xbf16> to vector<2x8x16xbf16>
    %c0_4 = arith.constant 0 : index
    %c0_5 = arith.constant 0 : index
    %c0_6 = arith.constant 0 : index
    %c0_7 = arith.constant 0 : index
    %5 = vector.load %arg4[%c0_4, %c0_5, %c0_6, %c0_7] : memref<1x2x8x16xbf16, #tpu.memory_space<vmem>>, vector<1x2x8x16xbf16>
    %6 = vector.shape_cast %5 : vector<1x2x8x16xbf16> to vector<2x8x16xbf16>
    %c0_8 = arith.constant 0 : index
    %c0_9 = arith.constant 0 : index
    %c0_10 = arith.constant 0 : index
    %c0_11 = arith.constant 0 : index
    %7 = vector.load %arg5[%c0_8, %c0_9, %c0_10, %c0_11] : memref<1x2x8x16xbf16, #tpu.memory_space<vmem>>, vector<1x2x8x16xbf16>
    %8 = vector.shape_cast %7 : vector<1x2x8x16xbf16> to vector<2x8x16xbf16>
    "tpu.trace_start"() <{level = 10 : i32, message = "hqc,hkc->hqk"}> : () -> ()
    %cst = arith.constant dense<0.000000e+00> : vector<2x8x8xf32>
    %9 = tpu.matmul %4, %6, %cst {dimension_numbers = #tpu.dot_dimension_numbers<[2], [2], [1], [1], [0, 0, 0, 1, 1, 1], [0], [0]>} : vector<2x8x16xbf16>, vector<2x8x16xbf16>, vector<2x8x8xf32> -> vector<2x8x8xf32>
    "tpu.trace_stop"() : () -> ()
    %c0_12 = arith.constant 0 : index
    %c0_13 = arith.constant 0 : index
    %c0_14 = arith.constant 0 : index
    %10 = vector.load %arg9[%c0_12, %c0_13, %c0_14] : memref<2x8x1xf32, #tpu.memory_space<vmem>>, vector<2x8x1xf32>
    %cst_15 = arith.constant dense<0xFF800000> : vector<2x8xf32>
    %11 = vector.multi_reduction <maximumf>, %9, %cst_15 [2] : vector<2x8x8xf32> to vector<2x8xf32>
    %12 = vector.shape_cast %11 : vector<2x8xf32> to vector<2x8x1xf32>
    %13 = arith.maximumf %10, %12 : vector<2x8x1xf32>
    %14 = arith.subf %10, %13 : vector<2x8x1xf32>
    %15 = math.exp %14 : vector<2x8x1xf32>
    %16 = vector.broadcast %13 : vector<2x8x1xf32> to vector<2x8x8xf32>
    %17 = arith.subf %9, %16 : vector<2x8x8xf32>
    %18 = math.exp %17 : vector<2x8x8xf32>
    %c0_16 = arith.constant 0 : index
    %c0_17 = arith.constant 0 : index
    %c0_18 = arith.constant 0 : index
    %19 = vector.load %arg10[%c0_16, %c0_17, %c0_18] : memref<2x8x1xf32, #tpu.memory_space<vmem>>, vector<2x8x1xf32>
    %20 = arith.mulf %15, %19 : vector<2x8x1xf32>
    %cst_19 = arith.constant dense<0.000000e+00> : vector<2x8xf32>
    %21 = vector.multi_reduction <add>, %18, %cst_19 [2] : vector<2x8x8xf32> to vector<2x8xf32>
    %22 = vector.shape_cast %21 : vector<2x8xf32> to vector<2x8x1xf32>
    %23 = arith.addf %20, %22 : vector<2x8x1xf32>
    %c0_20 = arith.constant 0 : index
    %c0_21 = arith.constant 0 : index
    %c0_22 = arith.constant 0 : index
    %24 = vector.load %arg10[%c0_20, %c0_21, %c0_22] : memref<2x8x1xf32, #tpu.memory_space<vmem>>, vector<2x8x1xf32>
    tpu.vector_store %arg10[%c0_20, %c0_21, %c0_22], %23 {strides = array<i32>} : memref<2x8x1xf32, #tpu.memory_space<vmem>>, vector<2x8x1xf32>,
    %c0_23 = arith.constant 0 : index
    %c0_24 = arith.constant 0 : index
    %c0_25 = arith.constant 0 : index
    %25 = vector.load %arg11[%c0_23, %c0_24, %c0_25] : memref<2x8x16xf32, #tpu.memory_space<vmem>>, vector<2x8x16xf32>
    %26 = vector.broadcast %15 : vector<2x8x1xf32> to vector<2x8x16xf32>
    %27 = arith.mulf %26, %25 : vector<2x8x16xf32>
    %28 = arith.truncf %18 : vector<2x8x8xf32> to vector<2x8x8xbf16>
    "tpu.trace_start"() <{level = 10 : i32, message = "hqk,hkc->hqc"}> : () -> ()
    %cst_26 = arith.constant dense<0.000000e+00> : vector<2x8x16xf32>
    %29 = tpu.matmul %28, %8, %cst_26 {dimension_numbers = #tpu.dot_dimension_numbers<[2], [1], [1], [2], [0, 0, 0, 1, 1, 2], [0], [0]>} : vector<2x8x8xbf16>, vector<2x8x16xbf16>, vector<2x8x16xf32> -> vector<2x8x16xf32>
    "tpu.trace_stop"() : () -> ()
    %30 = arith.addf %27, %29 : vector<2x8x16xf32>
    %c0_27 = arith.constant 0 : index
    %c0_28 = arith.constant 0 : index
    %c0_29 = arith.constant 0 : index
    %31 = vector.load %arg11[%c0_27, %c0_28, %c0_29] : memref<2x8x16xf32, #tpu.memory_space<vmem>>, vector<2x8x16xf32>
    tpu.vector_store %arg11[%c0_27, %c0_28, %c0_29], %30 {strides = array<i32>} : memref<2x8x16xf32, #tpu.memory_space<vmem>>, vector<2x8x16xf32>,
    %c0_30 = arith.constant 0 : index
    %c0_31 = arith.constant 0 : index
    %c0_32 = arith.constant 0 : index
    %32 = vector.load %arg9[%c0_30, %c0_31, %c0_32] : memref<2x8x1xf32, #tpu.memory_space<vmem>>, vector<2x8x1xf32>
    tpu.vector_store %arg9[%c0_30, %c0_31, %c0_32], %13 {strides = array<i32>} : memref<2x8x1xf32, #tpu.memory_space<vmem>>, vector<2x8x1xf32>,
    %c0_i32_33 = arith.constant 0 : i32
    %33 = arith.cmpi eq, %arg2, %c0_i32_33 : i32
    %34 = arith.extui %33 : i1 to i32
    %c0_i32_34 = arith.constant 0 : i32
    %35 = arith.cmpi ne, %34, %c0_i32_34 : i32
    scf.if %35 {
      %c0_35 = arith.constant 0 : index
      %c0_36 = arith.constant 0 : index
      %c0_37 = arith.constant 0 : index
      %36 = vector.load %arg11[%c0_35, %c0_36, %c0_37] : memref<2x8x16xf32, #tpu.memory_space<vmem>>, vector<2x8x16xf32>
      %c0_38 = arith.constant 0 : index
      %c0_39 = arith.constant 0 : index
      %c0_40 = arith.constant 0 : index
      %37 = vector.load %arg10[%c0_38, %c0_39, %c0_40] : memref<2x8x1xf32, #tpu.memory_space<vmem>>, vector<2x8x1xf32>
      %38 = tpu.reciprocal %37 : vector<2x8x1xf32> -> vector<2x8x1xf32>
      %39 = vector.broadcast %38 : vector<2x8x1xf32> to vector<2x8x16xf32>
      %40 = arith.mulf %36, %39 : vector<2x8x16xf32>
      %41 = arith.truncf %40 : vector<2x8x16xf32> to vector<2x8x16xbf16>
      %c0_41 = arith.constant 0 : index
      %c0_42 = arith.constant 0 : index
      %c0_43 = arith.constant 0 : index
      %42 = vector.load %arg6[%c0_41, %c0_42, %c0_43] : memref<2x16x32xbf16, #tpu.memory_space<vmem>>, vector<2x16x32xbf16>
      "tpu.trace_start"() <{level = 10 : i32, message = "hqc,hcd->hqd"}> : () -> ()
      %cst_44 = arith.constant dense<0.000000e+00> : vector<2x8x32xf32>
      %43 = tpu.matmul %41, %42, %cst_44 {dimension_numbers = #tpu.dot_dimension_numbers<[2], [1], [1], [2], [0, 0, 0, 1, 1, 2], [0], [0]>} : vector<2x8x16xbf16>, vector<2x16x32xbf16>, vector<2x8x32xf32> -> vector<2x8x32xf32>
      "tpu.trace_stop"() : () -> ()
      %cst_45 = arith.constant dense<0.000000e+00> : vector<8x32xf32>
      %44 = vector.multi_reduction <add>, %43, %cst_45 [0] : vector<2x8x32xf32> to vector<8x32xf32>
      %c0_46 = arith.constant 0 : index
      %c0_47 = arith.constant 0 : index
      %45 = vector.load %arg7[%c0_46, %c0_47] : memref<1x32xf32, #tpu.memory_space<vmem>>, vector<1x32xf32>
      %46 = vector.broadcast %45 : vector<1x32xf32> to vector<8x32xf32>
      %47 = arith.addf %44, %46 : vector<8x32xf32>
      %c0_48 = arith.constant 0 : index
      %c0_49 = arith.constant 0 : index
      %c0_50 = arith.constant 0 : index
      %48 = vector.load %arg8[%c0_48, %c0_49, %c0_50] : memref<1x8x32xf32, #tpu.memory_space<vmem>>, vector<1x8x32xf32>
      %49 = vector.shape_cast %48 : vector<1x8x32xf32> to vector<8x32xf32>
      %50 = vector.shape_cast %47 : vector<8x32xf32> to vector<1x8x32xf32>
      tpu.vector_store %arg8[%c0_48, %c0_49, %c0_50], %50 {strides = array<i32>} : memref<1x8x32xf32, #tpu.memory_space<vmem>>, vector<1x8x32xf32>,
    } else {
    }
    return
  }
  func.func @transform_0(%arg0: i32, %arg1: i32, %arg2: i32) -> (i32, i32, i32, i32) {
    %c0_i32 = arith.constant 0 : i32
    %c0_i32_0 = arith.constant 0 : i32
    %c0_i32_1 = arith.constant 0 : i32
    return %arg0, %c0_i32, %arg1, %c0_i32_0 : i32, i32, i32, i32
  }
  func.func @transform_1(%arg0: i32, %arg1: i32, %arg2: i32) -> (i32, i32, i32, i32) {
    %c0_i32 = arith.constant 0 : i32
    %c0_i32_0 = arith.constant 0 : i32
    %c0_i32_1 = arith.constant 0 : i32
    return %arg0, %c0_i32, %arg2, %c0_i32_0 : i32, i32, i32, i32
  }
  func.func @transform_2(%arg0: i32, %arg1: i32, %arg2: i32) -> (i32, i32, i32, i32) {
    %c0_i32 = arith.constant 0 : i32
    %c0_i32_0 = arith.constant 0 : i32
    %c0_i32_1 = arith.constant 0 : i32
    return %arg0, %c0_i32, %arg2, %c0_i32_0 : i32, i32, i32, i32
  }
  func.func @transform_3(%arg0: i32, %arg1: i32, %arg2: i32) -> (i32, i32, i32) {
    %c0_i32 = arith.constant 0 : i32
    %c0_i32_0 = arith.constant 0 : i32
    %c0_i32_1 = arith.constant 0 : i32
    %c0_i32_2 = arith.constant 0 : i32
    return %c0_i32, %c0_i32_0, %c0_i32_1 : i32, i32, i32
  }
  func.func @transform_4(%arg0: i32, %arg1: i32, %arg2: i32) -> (i32, i32) {
    %c0_i32 = arith.constant 0 : i32
    %c0_i32_0 = arith.constant 0 : i32
    %c0_i32_1 = arith.constant 0 : i32
    return %c0_i32, %c0_i32_0 : i32, i32
  }
  func.func @transform_5(%arg0: i32, %arg1: i32, %arg2: i32) -> (i32, i32, i32) {
    %c0_i32 = arith.constant 0 : i32
    %c0_i32_0 = arith.constant 0 : i32
    return %arg0, %arg1, %c0_i32 : i32, i32, i32
  }
}

</mosaic_0001>

<bundles_post_ra>
// kernel: tpu_custom_call.1
= control target key start
LH: loop header
LB: loop body
LE: loop exit
PB: predicated region body
PF: predicated region fallthrough
CT: control target
= control target key end

     0   :  { %s1748_s0 = inlined_call_operand.hbm [shape: bf16[2,2,8,16], index: 0, kind: input, shape index: {}]   ;;  %s1749_s1 = inlined_call_operand.hbm [shape: bf16[2,2,8,16], index: 1, kind: input, shape index: {}]   ;;  %s1750_s2 = inlined_call_operand.hbm [shape: bf16[2,2,8,16], index: 2, kind: input, shape index: {}]   ;;  %s1751_s3 = inlined_call_operand.hbm [shape: bf16[2,16,32], index: 3, kind: input, shape index: {}]   ;;  %s1752_s4 = inlined_call_operand.vmem [shape: f32[1,32], index: 4, kind: input, shape index: {}]   ;;  %s1753_s5 = inlined_call_operand.hbm [shape: f32[2,8,32], index: 5, kind: output, shape index: {}]  }
   0x1   :  { %1773 = sst [smem:[#allocation23_spill]] %s1748_s0 }
   0x2   :  { %1774 = sst [smem:[#allocation24_spill]] %s1749_s1 }
   0x3   :  { %10 = vsyncpa [#allocation6], 0 }
   0x4   :  { %12 = vsyncpa [#allocation6 + $0x1], 0 }
   0x5   :  { %13 = vsyncpa [#allocation9], 0 }
   0x6   :  { %15 = vsyncpa [#allocation9 + $0x1], 0 }
   0x7   :  { %16 = vsyncpa [#allocation12], 0 }
   0x8   :  { %17 = vsyncpa [#allocation7], 0 }
   0x9   :  { %19 = vsyncpa [#allocation7 + $0x1], 0  ;;  %s1374_s18 = smov 0   ;;  %s1376_s19 = smov 0  }
   0xa   :  { %s1378_s20 = smov 0   ;;  %s1380_s21 = smov 0  }
   0xb   :  { %s1382_s22 = smov 0   ;;  %s1384_s23 = smov 0  }
   0xc LB: > { %1775 = sst [smem:[#allocation18_spill]] %s1319_s20  ;;  %s44_s24 = sadd.s32 1, %s1327_s22  ;;  %s1331_s23 = sphi %s1384_s23, %s25_s23   ;;  %s1327_s22 = sphi %s1382_s22, %s1807_s22   ;;  %s1323_s21 = sphi %s1380_s21, %s1806_s21   ;;  %s1319_s20 = sphi %s1378_s20, %s1805_s20   ;;  %s1315_s19 = sphi %s1376_s19, %s1809_s19   ;;  %s1311_s18 = sphi %s1374_s18, %s1808_s18  }
   0xd   : > { %1776 = sst [smem:[#allocation19_spill]] %s1327_s22  ;;  %s53_s25 = sadd.s32 1, %s1319_s20 }
   0xe   : > { %1777 = sst [smem:[#allocation20_spill]] %s1331_s23  ;;  %p46_p0 = scmp.ge.s32.totalorder %s44_s24, 2 }
   0xf   : > { %p1754_p1 = scmp.ne.s32.totalorder %s1319_s20, %s1315_s19  ;;  %p61_p2 = scmp.eq.s32.totalorder %s1331_s23, 0 }
  0x10   : > { %s1811_s24 = smov (%p46_p0, %s44_s24), 0  ;;  %p1049_p6 = scmp.lt.s32.totalorder %s1331_s23, 2 }
  0x11   : > { %1778 = sst [smem:[#allocation21_spill]] %s1811_s24  ;;  %p62_p3 = por %p61_p2, %p1754_p1 }
  0x12   : > { %s48_s26 = ssub.s32 %s1327_s22, %s1811_s24  ;;  %s1759_s27 = sand.u32 1, %s1319_s20  }
  0x13   : > { %p51_p5 = scmp.eq.s32.totalorder %s48_s26, 0  ;;  %s1420_s28 = sshll.u32 %s1327_s22, 7 }
  0x14   : > { %s1427_s30 = sshll.u32 %s1759_s27, 3  ;;  %p1429_p7 = pnand %p1049_p6, %p62_p3 }
  0x15   : > { %s1423_s29 = scalar_select %p51_p5, %s1319_s20, %s53_s25  }
  0x16   : > { %s1780_s6 = scalar_select %p1429_p7, 1, 0 }
  0x17   : > { %1779 = sst [smem:[#allocation22_spill]] %s1423_s29  ;;  %s254_s7 = sand.u32 1, %s1331_s23  }
  0x18   : > { %s1781_s1 = sld [smem:[#allocation24_spill]]  ;;  %s258_s11 = scalar_lea.vmem [#allocation8], %s1427_s30 }
  0x19   : > { %s266_s12 = sshll.u32 %s258_s11, 4  ;;  %s1443_s13 = scalar_lea.sflag [#allocation9], %s254_s7  ;;  %s1441_s12 = int_to_ptr.vmem [resolvable:$true] %s266_s12 }
  0x1a   : > { %p1449_p9 = pneg %p1429_p7 }
  0x1c   : > { %s1782_s15 = scalar_select %p1449_p9, 1, 0 }
  0x1e   : > { %s1438_s10 = scalar_lea.hbm %s1781_s1, %s1420_s28  ;;  %s1128_s25 = scalar_lea.hbm %s1781_s1, 256 }
  0x1f   : > { %s1123_s14 = scalar_lea.hbm %s1438_s10, 128  ;;  %p1129_p12 = scmp.lt.u32.totalorder %s1438_s10, %s1781_s1 }
  0x20   : > { %p1124_p8 = scmp.ne.s32.totalorder %s1438_s10, %s1123_s14  ;;  %p1130_p13 = scmp.lt.u32.totalorder %s1128_s25, %s1123_s14 }
  0x21   : > { %p1132_p2 = scmp.lt.u32.totalorder %s1123_s14, %s1438_s10 }
  0x22   : > { %p1126_p10 = pnand %p1449_p9, %p1124_p8  ;;  %p1131_p0 = por %p1130_p13, %p1129_p12 }
  0x24   : > { %p1127_p11 = pneg %p1126_p10  ;;  %p1133_p3 = por %p1132_p2, %p1131_p0 }
  0x26   : > { %p1134_p5 = pnand %p1133_p3, %p1127_p11 }
  0x28   : > { %1137 = shalt.err (!%p1134_p5)
}
  0x29   : > { %s1138_s7 = scalar_lea.vmem %s1441_s12, 128  ;;  %s1333_s9 = smov [#allocation8]  }
  0x2a   : > { %p1139_p6 = scmp.ne.s32.totalorder %s1441_s12, %s1138_s7  ;;  %s1143_s11 = sshll.u32 %s1333_s9, 4  ;;  %s1144_s11 = int_to_ptr.vmem [resolvable:$false] %s1143_s11 }
  0x2b   : > { %s1145_s16 = scalar_lea.vmem %s1144_s11, 256  ;;  %p1146_p4 = scmp.lt.s32.totalorder %s1441_s12, %s1144_s11 }
  0x2c   : > { %p1141_p8 = pnand %p1139_p6, %p1449_p9  ;;  %p1147_p1 = scmp.lt.s32.totalorder %s1145_s16, %s1138_s7 }
  0x2e   : > { %p1142_p10 = pneg %p1141_p8  ;;  %p1148_p12 = por %p1147_p1, %p1146_p4 }
  0x30   : > { %p1149_p13 = pnand %p1148_p12, %p1142_p10 }
  0x32   : > { %1152 = shalt.err (!%p1149_p13)
}
  0x33   : > { %s1755_s14 = smov 64   ;;  %s1757_s17 = smov 4  }
  0x34   : > { %1040 = dma.hbm_to_vmem [thread:$0]  (!%p1429_p7), %s1438_s10, 128, %s1441_s12, %s1443_s13, %s1755_s14, %s1755_s14, %s1757_s17  }
  0x35   : > { %s1477_s25 = sadd.s32 4294967295, %s1331_s23   ;;  %s935_s26 = sadd.s32 4294967294, %s1331_s23  }
  0x36   : > { %p66_p1 = scmp.ne.s32.totalorder %s1315_s19, %s1311_s18  ;;  %p1764_p4 = scmp.eq.s32.totalorder %s1477_s25, 0 }
  0x37   : > { %p190_p11 = scmp.eq.s32.totalorder %s1477_s25, 1  ;;  %p196_p0 = scmp.eq.s32.totalorder %s935_s26, 1 }
  0x38   : > { %p936_p2 = scmp.ge.s32.totalorder %s1331_s23, 1  ;;  %p1487_p3 = por %p1764_p4, %p66_p1 }
  0x39   : > { %p1784_p5 = scmp.ne.s32.totalorder %s1319_s20, %s1315_s19  ;;  %p1498_p8 = por %p196_p0, %p66_p1 }
  0x3a   : > { %s1783_s8 = scalar_select %p1487_p3, 1, 0 }
  0x3b   : > { %p1494_p6 = por %p190_p11, %p1784_p5  ;;  %p203_p10 = scmp.lt.s32.totalorder %s1331_s23, 3 }
  0x3c   : > { %s1786_s12 = scalar_select %p1498_p8, 1, 0 }
  0x3d   : > { %s1785_s10 = scalar_select %p1494_p6, 1, 0 }
  0x3e   : > { %p1503_p12 = pnand %p936_p2, %p203_p10  ;;  %s1336_s9 = smov [#allocation11]  }
  0x3f   : > { %s215_s11 = sshll.u32 %s1336_s9, 4  ;;  %s1788_s0 = sld [smem:[#allocation23_spill]]  ;;  %s1507_s11 = int_to_ptr.vmem [resolvable:$true] %s215_s11 }
  0x40   : > { %s1787_s7 = scalar_select %p1503_p12, 1, 0 }
  0x41   : > { %p1030_p13 = pneg %p1503_p12  ;;  %s236_s17 = scalar_lea.vmem [#allocation5], %s1427_s30 }
  0x42   : > { %s244_s27 = sshll.u32 %s236_s17, 4  ;;  %s1790_s9 = sand.u32 1, %s1319_s20   ;;  %s1524_s27 = int_to_ptr.vmem [resolvable:$true] %s244_s27 }
  0x43   : > { %p1520_p1 = pnand %p1030_p13, %p1764_p4  ;;  %s1528_s24 = scalar_lea.sflag [#allocation6], %s1790_s9 }
  0x45   : > { %s1515_s14 = scalar_lea.hbm %s1788_s0, %s1420_s28  ;;  %s1158_s29 = scalar_lea.hbm %s1788_s0, 256 }
  0x46   : > { %s1789_s1 = scalar_select %p1520_p1, 1, 0 }
  0x47   : > { %s1153_s22 = scalar_lea.hbm %s1515_s14, 128  ;;  %p1159_p5 = scmp.lt.u32.totalorder %s1515_s14, %s1788_s0 }
  0x48   : > { %p1154_p11 = scmp.ne.s32.totalorder %s1515_s14, %s1153_s22  ;;  %p1160_p10 = scmp.lt.u32.totalorder %s1158_s29, %s1153_s22 }
  0x49   : > { %p1162_p4 = scmp.lt.u32.totalorder %s1153_s22, %s1515_s14 }
  0x4a   : > { %p1156_p0 = pnand %p1154_p11, %p1449_p9  ;;  %p1161_p13 = por %p1160_p10, %p1159_p5 }
  0x4c   : > { %p1157_p2 = pneg %p1156_p0  ;;  %p1163_p8 = por %p1162_p4, %p1161_p13 }
  0x4e   : > { %p1164_p6 = pnand %p1163_p8, %p1157_p2 }
  0x50   : > { %1167 = shalt.err (!%p1164_p6)
}
  0x51   : > { %s1168_s9 = scalar_lea.vmem %s1524_s27, 128  ;;  %s1337_s16 = smov [#allocation5]  }
  0x52   : > { %p1169_p11 = scmp.ne.s32.totalorder %s1524_s27, %s1168_s9  ;;  %s1173_s26 = sshll.u32 %s1337_s16, 4  ;;  %s1174_s26 = int_to_ptr.vmem [resolvable:$false] %s1173_s26 }
  0x53   : > { %s1175_s23 = scalar_lea.vmem %s1174_s26, 256  ;;  %p1176_p12 = scmp.lt.s32.totalorder %s1524_s27, %s1174_s26 }
  0x54   : > { %p1171_p0 = pnand %p1169_p11, %p1449_p9  ;;  %p1177_p1 = scmp.lt.s32.totalorder %s1175_s23, %s1168_s9 }
  0x56   : > { %p1172_p3 = pneg %p1171_p0  ;;  %p1178_p5 = por %p1177_p1, %p1176_p12 }
  0x58   : > { %p1179_p10 = pnand %p1178_p5, %p1172_p3 }
  0x5a   : > { %1182 = shalt.err (!%p1179_p10)
}
  0x5b   : > { %s1791_s22 = smov 4   ;;  %s1792_s29 = smov 64  }
  0x5c   : > { %1037 = dma.hbm_to_vmem [thread:$0]  (!%p1429_p7), %s1515_s14, 128, %s1524_s27, %s1528_s24, %s1792_s29, %s1792_s29, %s1791_s22  }
  0x5d   : > { %s1183_s16 = scalar_lea.hbm %s1751_s3, 256  ;;  %p1793_p3 = scmp.ne.s32.totalorder %s1789_s1, 0 }
  0x5e   : > { %p1184_p4 = scmp.ne.s32.totalorder %s1751_s3, %s1183_s16  ;;  %p1190_p1 = scmp.lt.u32.totalorder %s1183_s16, %s1751_s3 }
  0x5f   : > { %p1185_p6 = pneg %p1793_p3 }
  0x61   : > { %p1186_p8 = pnand %p1185_p6, %p1184_p4 }
  0x63   : > { %p1187_p12 = pneg %p1186_p8 }
  0x65   : > { %p1192_p2 = pnand %p1190_p1, %p1187_p12 }
  0x67   : > { %1195 = shalt.err (!%p1192_p2)
}
  0x68   : > { %s1196_s24 = scalar_lea.vmem %s1507_s11, 256  ;;  %p1204_p5 = scmp.lt.s32.totalorder %s1507_s11, %s1507_s11 }
  0x69   : > { %p1197_p13 = scmp.ne.s32.totalorder %s1507_s11, %s1196_s24  ;;  %p1205_p10 = scmp.lt.s32.totalorder %s1196_s24, %s1196_s24 }
  0x6b   : > { %p1199_p11 = pnand %p1197_p13, %p1185_p6  ;;  %p1206_p7 = por %p1205_p10, %p1204_p5 }
  0x6d   : > { %p1200_p0 = pneg %p1199_p11 }
  0x6f   : > { %p1207_p9 = pnand %p1206_p7, %p1200_p0 }
  0x71   : > { %1210 = shalt.err (!%p1207_p9)
}
  0x72   : > { %1033 = dma.hbm_to_vmem [thread:$0]  (!%p1793_p3), %s1751_s3, 256, %s1507_s11, [#allocation12], %s1792_s29, %s1792_s29, %s1791_s22  }
  0x73   : > { %s1583_s17 = scalar_lea.hbm %s1750_s2, %s1420_s28  ;;  %s280_s1 = scalar_lea.vmem [#allocation10], %s1427_s30 }
  0x74   : > { %s288_s16 = sshll.u32 %s280_s1, 4  ;;  %s1211_s26 = scalar_lea.hbm %s1583_s17, 128  ;;  %s1586_s16 = int_to_ptr.vmem [resolvable:$true] %s288_s16 }
  0x75   : > { %p1212_p7 = scmp.ne.s32.totalorder %s1583_s17, %s1211_s26  ;;  %p1794_p9 = scmp.ne.s32.totalorder %s1782_s15, 0 }
  0x76   : > { %s1216_s23 = scalar_lea.hbm %s1750_s2, 256  ;;  %p1217_p3 = scmp.lt.u32.totalorder %s1583_s17, %s1750_s2 }
  0x77   : > { %p1214_p4 = pnand %p1212_p7, %p1794_p9  ;;  %p1218_p8 = scmp.lt.u32.totalorder %s1216_s23, %s1211_s26 }
  0x78   : > { %p1220_p1 = scmp.lt.u32.totalorder %s1211_s26, %s1583_s17 }
  0x79   : > { %p1215_p6 = pneg %p1214_p4  ;;  %p1219_p12 = por %p1218_p8, %p1217_p3 }
  0x7b   : > { %p1221_p2 = por %p1220_p1, %p1219_p12 }
  0x7d   : > { %p1222_p13 = pnand %p1221_p2, %p1215_p6 }
  0x7f   : > { %1225 = shalt.err (!%p1222_p13)
}
  0x80   : > { %s1226_s30 = scalar_lea.vmem %s1586_s16, 128  ;;  %s1338_s0 = smov [#allocation10]  }
  0x81   : > { %p1227_p11 = scmp.ne.s32.totalorder %s1586_s16, %s1226_s30  ;;  %s1231_s20 = sshll.u32 %s1338_s0, 4  ;;  %s1232_s20 = int_to_ptr.vmem [resolvable:$false] %s1231_s20 }
  0x82   : > { %s1233_s27 = scalar_lea.vmem %s1232_s20, 256  ;;  %p1234_p10 = scmp.lt.s32.totalorder %s1586_s16, %s1232_s20 }
  0x83   : > { %p1229_p0 = pnand %p1227_p11, %p1794_p9  ;;  %p1235_p7 = scmp.lt.s32.totalorder %s1233_s27, %s1226_s30 }
  0x85   : > { %p1230_p5 = pneg %p1229_p0  ;;  %p1236_p4 = por %p1235_p7, %p1234_p10 }
  0x87   : > { %p1237_p3 = pnand %p1236_p4, %p1230_p5 }
  0x89   : > { %1240 = shalt.err (!%p1237_p3)
}
  0x8a   : > { %p1795_p6 = scmp.ne.s32.totalorder %s1780_s6, 0  ;;  %p1796_p9 = scmp.ne.s32.totalorder %s1787_s7, 0 }
  0x8b   : > { %s1616_s15 = sand.u32 (!%p1796_p9), 1, %s1315_s19   ;;  %p1797_p8 = scmp.ne.s32.totalorder (!%p1796_p9), %s1783_s8, 0 }
  0x8c   : > { %1043 = dma.hbm_to_vmem [thread:$0]  (!%p1795_p6), %s1583_s17, 128, %s1586_s16, %s1443_s13, %s1792_s29, %s1792_s29, %s1791_s22  }
  0x8d   : > { %300 = sbr.rel (%p1796_p9) target bundleno = 1196 (0x4ac), region = 40  ;;  %s1619_s14 = sshll.u32 (!%p1796_p9), %s1616_s15, 3 }
  0x8e   : > { %s303_s6 = scalar_lea.sflag (!%p1796_p9), [#allocation6], %s1616_s15  ;;  %s306_s1 = scalar_lea.vmem (!%p1796_p9), [#allocation5], %s1619_s14 }
  0x94   : > { %1294 = dma.done.wait (%p1797_p8), %s303_s6, 128  }
  0x95   : > { %1296 = vsyncadd (%p1797_p8), %s303_s6, 4294967168  ;;  %s311_s13 = sand.u32 1, %s1477_s25   ;;  %s315_s22 = scalar_lea.vmem [#allocation8], %s1619_s14 }
  0x96   : > { %s312_s7 = scalar_lea.sflag [#allocation9], %s311_s13 }
  0x97   : > { %1298 = dma.done.wait (%p1797_p8), %s312_s7, 256  }
  0x98   : > { %1300 = vsyncadd (%p1797_p8), %s312_s7, 4294967040  ;;  %s324_s29 = scalar_lea.vmem [#allocation10], %s1619_s14  ;;  %p1798_p12 = scmp.eq.s32.totalorder %s1477_s25, 0 }
  0x9a   : > { %1302 = dma.done.wait (%p1798_p12), [#allocation12], 256   ;;  %p1799_p1 = pmov %p1798_p12 }
  0x9b   : > { %vm375_vm0 = vcmask 130048   ;;  %v1339_v0 = vmov 0.0   ;;  %vm1340_vm1 = vmmov 0   ;;  %v380_v1 = vld [vmem:[%s315_s22] sm:$0xf]  ;;  %vm370_vm2 = vcmask 7168  }
  0x9c   : > { %1304 = vsyncadd (%p1799_p1), [#allocation12], 4294967040  ;;  %982 = vmatprep.subr.bf16.mxu0 %v1339_v0  ;;  %376 = vst.msk [vmem:[#allocation4] sm:$0xff] %vm375_vm0, %v1339_v0  ;;  %988 = vmatprep.subr.bf16.mxu1 %v1339_v0  ;;  %v381_v2 = vld [vmem:[%s315_s22 + $0x4] sm:$0xf]  ;;  %v389_v3 = vsel %vm375_vm0, %v380_v1, 0 }
  0x9d   : > { %377 = vst.msk [vmem:[#allocation4 + $0x8] sm:$0xff] %vm375_vm0, %v1339_v0  ;;  %984 = vmatprep.mubr.msk.bf16.mxu0 %vm1340_vm1, %v1339_v0  ;;  %990 = vmatprep.mubr.msk.bf16.mxu1 %vm1340_vm1, %v1339_v0  ;;  %v435_v4 = vsel %vm375_vm0, %v381_v2, 0  ;;  %v378_v5 = vld [vmem:[%s306_s1] sm:$0xf]  ;;  %v379_v6 = vld [vmem:[%s306_s1 + $0x4] sm:$0xf] }
  0x9e   : > { %983 = vmatpush3.bf16.xpose.msra.mxu0 %v389_v3  ;;  %989 = vmatpush3.bf16.xpose.msra.mxu1 %v435_v4  ;;  %v1341_v7 = vmov -inf   ;;  %373 = vst.msk [vmem:[#allocation3] sm:$0xff] %vm370_vm2, %v1339_v0  ;;  %374 = vst.msk [vmem:[#allocation3 + $0x8] sm:$0xff] %vm370_vm2, %v1339_v0  ;;  %vm479_vm3 = vcmask 64512   ;;  %v1342_v18 = vmov 0   ;;  %vm544_vm4 = vcmask 1043456  }
  0x9f   : > { %994 = vmatprep.subr.bf16.mxu0 %v1339_v0  ;;  %1000 = vmatprep.subr.bf16.mxu1 %v1339_v0  ;;  %371 = vst.msk [vmem:[#allocation2] sm:$0xff] %vm370_vm2, %v1341_v7  ;;  %372 = vst.msk [vmem:[#allocation2 + $0x8] sm:$0xff] %vm370_vm2, %v1341_v7  ;;  %v382_v27 = vld [vmem:[%s324_s29] sm:$0xf]  ;;  %v383_v29 = vld [vmem:[%s324_s29 + $0x4] sm:$0xf] }
  0xa0   : > { %1107 = vset.pattern.permute.xlu1 %v1342_v18  ;;  %1108 = vset.pattern.permute.xlu0 %v1342_v18  ;;  %v546_v28 = vsel %vm544_vm4, %v382_v27, 0  ;;  %v592_v30 = vsel %vm544_vm4, %v383_v29, 0  ;;  %v1109_v58 = vld [vmem:[#allocation11] sm:$0xff]   ;;  %v1110_v59 = vld [vmem:[#allocation11 + $0x8] sm:$0xff]   ;;  %vm765_vm5 = vcmask 261120   ;;  %s964_s17 = sshll.u32 %s1323_s21, 7 }
  0xa1   : > { %s364_s16 = scalar_lea.vmem [#allocation13], %s1619_s14  ;;  %s1698_s23 = scalar_lea.hbm %s1753_s5, %s964_s17 }
  0xa2   : > { %s793_s26 = sshll.u32 %s364_s16, 4  ;;  %s779_s24 = scalar_lea.sflag [#allocation7], %s1616_s15  ;;  %s1700_s26 = int_to_ptr.vmem [resolvable:$true] %s793_s26 }
  0xa3   : > { %v525_v61 = vld [vmem:[#allocation4] sm:$0xff]  ;;  %s1241_s21 = scalar_lea.vmem %s1700_s26, 128  ;;  %p1800_p13 = scmp.ne.s32.totalorder %s1785_s10, 0 }
  0xa4   : > { %p1242_p2 = scmp.ne.s32.totalorder %s1700_s26, %s1241_s21  ;;  %s1343_s28 = smov [#allocation13]  }
  0xa5   : > { %985 = vmatmul.mubr.msk.bf16.vlgmr.msra.gmra.mrb[0].mxu0 %vm375_vm0, %v378_v5  ;;  %991 = vmatmul.mubr.msk.bf16.vlgmr.msra.gmra.mrb[0].mxu1 %vm375_vm0, %v379_v6  ;;  %v510_v47 = vld [vmem:[#allocation3] sm:$0xff]  ;;  %v511_v50 = vld [vmem:[#allocation3 + $0x8] sm:$0xff]  ;;  %s1245_s30 = sshll.u32 %s1343_s28, 4  ;;  %s1246_s30 = int_to_ptr.vmem [resolvable:$false] %s1245_s30 }
  0xa6   : > { %996 = vmatprep.mubr.msk.bf16.mxu0 %vm1340_vm1, %v1339_v0  ;;  %1002 = vmatprep.mubr.msk.bf16.mxu1 %vm1340_vm1, %v1339_v0  ;;  %v477_v19 = vld [vmem:[#allocation2] sm:$0xff]  ;;  %v478_v22 = vld [vmem:[#allocation2 + $0x8] sm:$0xff]  ;;  %p1243_p11 = pnand %p1242_p2, %p1800_p13  ;;  %s1247_s0 = scalar_lea.vmem %s1246_s30, 256 }
  0xa7   : > { %995 = vmatpush3.bf16.msra.mxu0 %v546_v28  ;;  %1001 = vmatpush3.bf16.msra.mxu1 %v592_v30  ;;  %p1248_p5 = scmp.lt.s32.totalorder %s1700_s26, %s1246_s30  ;;  %p1249_p10 = scmp.lt.s32.totalorder %s1247_s0, %s1241_s21 }
  0xa8   : > { %1006 = vmatprep.subr.bf16.mxu0 %v1339_v0  ;;  %1012 = vmatprep.subr.bf16.mxu1 %v1339_v0  ;;  %p1244_p0 = pneg %p1243_p11 }
  0xa9   : > { %p1250_p7 = por %p1249_p10, %p1248_p5 }
  0xab   : > { %p1251_p4 = pnand %p1250_p7, %p1244_p0 }
 0x178   : > { %v425_v8 = vpop.f32.mrb[0].mxu0  ;;  %v471_v9 = vpop.f32.mrb[0].mxu1 }
 0x179   : > { %v986_v10 = vpop.f32.mrb[1].mxu0  ;;  %v992_v11 = vpop.f32.mrb[1].mxu1  ;;  %v480_v12 = vsel %vm479_vm3, %v425_v8, -inf  ;;  %v483_v17 = vsel %vm479_vm3, %v471_v9, -inf }
 0x17a   : > { %481 = vmax.xlane.f32.xlu0 %v480_v12  ;;  %v428_v13 = vpop.f32.mrb[2].mxu0  ;;  %v474_v14 = vpop.f32.mrb[2].mxu1 }
 0x17b   : > { %v987_v15 = vpop.f32.mrb[3].mxu0  ;;  %v993_v16 = vpop.f32.mrb[3].mxu1 }
 0x17e   : > { %484 = vmax.xlane.f32.xlu0 %v483_v17 }
 0x207   : > { %v482_v20 = vpop.xlane.xlu0 %481 }
 0x208   : > { %v486_v21 = vmax.f32 %v477_v19, %v482_v20 }
 0x20a   : > { %v488_v23 = vsub.f32 %v477_v19, %v486_v21  ;;  %638 = vst.msk [vmem:[#allocation2] sm:$0xff] %vm370_vm2, %v486_v21  ;;  %496 = vperm.xlu1 %1107, %v486_v21  }
 0x20b   : > { %v485_v24 = vpop.xlane.xlu0 %484 }
 0x20c   : > { %v487_v25 = vmax.f32 %v478_v22, %v485_v24  ;;  %v490_v44 = vmul.f32 1.442695, %v488_v23 }
 0x20e   : > { %v489_v26 = vsub.f32 %v478_v22, %v487_v25  ;;  %639 = vst.msk [vmem:[#allocation2 + $0x8] sm:$0xff] %vm370_vm2, %v487_v25  ;;  %501 = vperm.xlu1 %1107, %v487_v25  }
 0x210   : > { %v492_v43 = vmul.f32 1.442695, %v489_v26  ;;  %v962_v26 = vld [vmem:[%s1752_s4] ss:$0 sm:$0xff] }
 0x289   : > { %v497_v31 = vpop.permute.xlu1 %496 }
 0x28a   : > { %v504_v32 = vsub.f32 %v425_v8, %v497_v31 }
 0x28c   : > { %v506_v33 = vmul.f32 1.442695, %v504_v32 }
 0x28d   : > { %v502_v34 = vpop.permute.xlu1 %501 }
 0x28e   : > { %1111 = vpow2.f32 %v506_v33  ;;  %v505_v35 = vsub.f32 %v471_v9, %v502_v34 }
 0x290   : > { %v508_v36 = vmul.f32 1.442695, %v505_v35 }
 0x292   : > { %1113 = vpow2.f32 %v508_v36 }
 0x293   : > { %1115 = vpow2.f32 %v492_v43 }
 0x294   : > { %1117 = vpow2.f32 %v490_v44 }
 0x298   : > { %v1112_v37 = vpop.eup %1111 }
 0x299   : > { %v514_v38 = vsel %vm479_vm3, %v1112_v37, 0.0  ;;  %v539_v39 = vpack.c.bf16 %v1112_v37, %v1112_v37 }
 0x29a   : > { %515 = vadd.xlane.f32.xlu0 %v514_v38 }
 0x29b   : > { %997 = vmatmul.mubr.msk.bf16.vlgmr.msra.gmra.mrb[4].mxu0 %vm479_vm3, %v539_v39 }
 0x29c   : > { %v1114_v40 = vpop.eup %1113  ;;  %1008 = vmatprep.mubr.msk.bf16.mxu0 %vm1340_vm1, %v1339_v0  ;;  %1007 = vmatpush3.bf16.msra.mxu0 %v1109_v58 }
 0x29d   : > { %v517_v41 = vsel %vm479_vm3, %v1114_v40, 0.0  ;;  %v540_v42 = vpack.c.bf16 %v1114_v40, %v1114_v40  ;;  %v1116_v45 = vpop.eup %1115 }
 0x29e   : > { %518 = vadd.xlane.f32.xlu1 %v517_v41  ;;  %v1118_v46 = vpop.eup %1117  ;;  %v513_v52 = vmul.f32 %v1116_v45, %v511_v50 }
 0x29f   : > { %1003 = vmatmul.mubr.msk.bf16.vlgmr.msra.gmra.mrb[4].mxu1 %vm479_vm3, %v540_v42  ;;  %v512_v48 = vmul.f32 %v1118_v46, %v510_v47 }
 0x2a0   : > { %1014 = vmatprep.mubr.msk.bf16.mxu1 %vm1340_vm1, %v1339_v0  ;;  %1013 = vmatpush3.bf16.msra.mxu1 %v1110_v59  ;;  %v526_v0 = vld [vmem:[#allocation4 + $0x8] sm:$0xff] }
 0x2af   : > { %534 = vperm.xlu1 %1107, %v1116_v45  }
 0x2b0   : > { %529 = vperm.xlu0 %1108, %v1118_v46  }
 0x327   : > { %v516_v49 = vpop.xlane.xlu0 %515 }
 0x328   : > { %v520_v51 = vadd.f32 %v516_v49, %v512_v48 }
 0x32a   : > { %523 = vst.msk [vmem:[#allocation3] sm:$0xff] %vm370_vm2, %v520_v51 }
 0x32b   : > { %v519_v53 = vpop.xlane.xlu1 %518 }
 0x32c   : > { %v521_v54 = vadd.f32 %v519_v53, %v513_v52 }
 0x32e   : > { %524 = vst.msk [vmem:[#allocation3 + $0x8] sm:$0xff] %vm370_vm2, %v521_v54 }
 0x32f   : > { %v530_v62 = vpop.permute.xlu0 %529  ;;  %v535_v1 = vpop.permute.xlu1 %534 }
 0x330   : > { %v537_v63 = vmul.f32 %v530_v62, %v525_v61  ;;  %v538_v6 = vmul.f32 %v535_v1, %v526_v0 }
 0x331   : > { %v645_v55 = vld [vmem:[#allocation3] sm:$0xff] }
 0x332   : > { %1119 = vrcp.f32 %v645_v55 }
 0x335   : > { %v646_v56 = vld [vmem:[#allocation3 + $0x8] sm:$0xff] }
 0x336   : > { %1121 = vrcp.f32 %v646_v56 }
 0x33c   : > { %v1120_v57 = vpop.eup %1119 }
 0x33d   : > { %651 = vperm.xlu0 %1108, %v1120_v57  }
 0x340   : > { %v1122_v60 = vpop.eup %1121 }
 0x341   : > { %656 = vperm.xlu0 %1108, %v1122_v60  }
 0x36e   : > { %v582_v2 = vpop.f32.mrb[4].mxu0 }
 0x36f   : > { %v634_v3 = vadd.f32 %v582_v2, %v537_v63  ;;  %v998_v4 = vpop.f32.mrb[5].mxu0 }
 0x370   : > { %v585_v5 = vpop.f32.mrb[6].mxu0 }
 0x371   : > { %636 = vst.msk [vmem:[#allocation4] sm:$0xff] %vm375_vm0, %v634_v3  ;;  %v999_v7 = vpop.f32.mrb[7].mxu0 }
 0x372   : > { %v628_v8 = vpop.f32.mrb[4].mxu1 }
 0x373   : > { %v635_v9 = vadd.f32 %v628_v8, %v538_v6  ;;  %v1004_v10 = vpop.f32.mrb[5].mxu1 }
 0x374   : > { %v631_v11 = vpop.f32.mrb[6].mxu1 }
 0x375   : > { %637 = vst.msk [vmem:[#allocation4 + $0x8] sm:$0xff] %vm375_vm0, %v635_v9  ;;  %v1005_v12 = vpop.f32.mrb[7].mxu1 }
 0x378   : > { %v643_v13 = vld [vmem:[#allocation4] sm:$0xff] }
 0x37c   : > { %v644_v17 = vld [vmem:[#allocation4 + $0x8] sm:$0xff] }
 0x3bc   : > { %v652_v14 = vpop.permute.xlu0 %651 }
 0x3bd   : > { %v659_v15 = vmul.f32 %v652_v14, %v643_v13 }
 0x3bf   : > { %v661_v16 = vpack.c.bf16 %v659_v15, %v659_v15 }
 0x3c0   : > { %v657_v18 = vpop.permute.xlu0 %656 }
 0x3c1   : > { %v660_v19 = vmul.f32 %v657_v18, %v644_v17  ;;  %1009 = vmatmul.mubr.msk.bf16.vlgmr.msra.gmra.mrb[8].mxu0 %vm375_vm0, %v661_v16 }
 0x3c3   : > { %v662_v20 = vpack.c.bf16 %v660_v19, %v660_v19 }
 0x3c5   : > { %1015 = vmatmul.mubr.msk.bf16.vlgmr.msra.gmra.mrb[8].mxu1 %vm375_vm0, %v662_v20 }
 0x494   : > { %v710_v21 = vpop.f32.mrb[8].mxu0 }
 0x495   : > { %v1010_v22 = vpop.f32.mrb[9].mxu0  ;;  %v766_v27 = vsel %vm765_vm5, %v710_v21, 0.0 }
 0x496   : > { %v713_v23 = vpop.f32.mrb[10].mxu0 }
 0x497   : > { %v1011_v24 = vpop.f32.mrb[11].mxu0 }
 0x498   : > { %v759_v25 = vpop.f32.mrb[8].mxu1 }
 0x499   : > { %v767_v28 = vsel %vm765_vm5, %v759_v25, 0.0  ;;  %v1016_v29 = vpop.f32.mrb[9].mxu1 }
 0x49a   : > { %v768_v30 = vadd.f32 %v767_v28, %v766_v27  ;;  %v762_v31 = vpop.f32.mrb[10].mxu1 }
 0x49b   : > { %v1017_v32 = vpop.f32.mrb[11].mxu1 }
 0x49c   : > { %v776_v33 = vadd.f32 %v962_v26, %v768_v30 }
 0x49e   : > { %777 = vst.msk [vmem:[%s364_s16] sm:$0xff] %vm765_vm5, %v776_v33 }
 0x49f   : > { %1254 = shalt.err (!%p1251_p4)
}
 0x4a0   : > { %s1255_s20 = scalar_lea.hbm %s1698_s23, 128  ;;  %s1259_s14 = scalar_lea.hbm %s1753_s5, 256 }
 0x4a1   : > { %p1256_p3 = scmp.ne.s32.totalorder %s1698_s23, %s1255_s20  ;;  %p1260_p8 = scmp.lt.u32.totalorder %s1698_s23, %s1753_s5 }
 0x4a2   : > { %p1261_p12 = scmp.lt.u32.totalorder %s1259_s14, %s1255_s20  ;;  %p1263_p2 = scmp.lt.u32.totalorder %s1255_s20, %s1698_s23 }
 0x4a3   : > { %p1257_p6 = pnand %p1256_p3, %p1800_p13 }
 0x4a4   : > { %p1262_p1 = por %p1261_p12, %p1260_p8 }
 0x4a5   : > { %p1258_p9 = pneg %p1257_p6 }
 0x4a6   : > { %p1264_p11 = por %p1263_p2, %p1262_p1 }
 0x4a8   : > { %p1265_p0 = pnand %p1264_p11, %p1258_p9 }
 0x4aa   : > { %1268 = shalt.err (!%p1265_p0)
}
 0x4ab   : > { %1028 = dma.vmem_to_hbm [thread:$0]  (%p1800_p13), %s1700_s26, 128, %s1698_s23, %s779_s24  }
 0x4ac PF: > { %s1801_s13 = sld [smem:[#allocation20_spill]]  ;;  %s805_s7 = sand.u32 1, %s1311_s18  }
 0x4ad   : > { %p1802_p5 = scmp.ne.s32.totalorder %s1786_s12, 0  ;;  %s806_s22 = scalar_lea.sflag [#allocation7], %s805_s7 }
 0x4b2   : > { %p1803_p10 = scmp.ge.s32.totalorder %s1801_s13, 2 }
 0x4b4   : > { %p1045_p7 = pnand %p1803_p10, %p1802_p5 }
 0x4b6   : > { %1306 = dma.done.wait (!%p1045_p7), %s806_s22, 128  }
 0x4b7   : > { %1308 = vsyncadd (!%p1045_p7), %s806_s22, 4294967168  ;;  %s25_s23 = sadd.s32 1, %s1801_s13   ;;  %s1804_s29 = sld [smem:[#allocation18_spill]] }
 0x4b8   : > { %p22_p4 = scmp.ge.s32.totalorder %s25_s23, 4   ;;  %s1805_s20 = sld [smem:[#allocation22_spill]] }
 0x4b9   : > { %s1806_s21 = sld [smem:[#allocation19_spill]]  ;;  %s1807_s22 = sld [smem:[#allocation21_spill]] }
 0x4ba   : > { %s1808_s18 = smov %s1315_s19  ;;  %24 = sbr.rel (!%p22_p4) target bundleno = 12 (0xc), region = 121 }
 0x4bd   : > { %s1809_s19 = smov %s1804_s29 }
 0x4c1   :  { %811 = vsyncpa [#allocation6], 1 }
 0x4c2   :  { %813 = vsyncpa [#allocation6 + $0x1], 1 }
 0x4c3   :  { %814 = vsyncpa [#allocation9], 1 }
 0x4c4   :  { %816 = vsyncpa [#allocation9 + $0x1], 1 }
 0x4c5   :  { %817 = vsyncpa [#allocation12], 1 }
 0x4c6   :  { %818 = vsyncpa [#allocation7], 1 }
 0x4c7   :  { %820 = vsyncpa [#allocation7 + $0x1], 1 }

</bundles_post_ra>
